<compile_context>
chip_gen: v6e
topology: v6e:2x2x1
jax: 0.10.0
libtpu: 0.0.40
codegen_flags: <defaults>
</compile_context>

<pallas_src>
import jax
import jax.numpy as jnp
from jax import lax
from jax.experimental import pallas as pl
from jax.experimental.pallas import tpu as pltpu


def _round_up(x, m):
    return ((x + m - 1) // m) * m


# ---------------------------------------------------------------------------
# Fused path: small tables resident in VMEM, gather done in-kernel via a
# one-hot matmul on the (otherwise idle) MXU.
# ---------------------------------------------------------------------------
def _fused_distmult_kernel(s_ref, p_ref, o_ref, ent_ref, rel_ref, out_ref):
    tb = s_ref.shape[0]
    n_ent = ent_ref.shape[0]
    n_rel = rel_ref.shape[0]

    ent = ent_ref[...]
    rel = rel_ref[...]
    if ent.dtype != jnp.float32:
        ent = ent.astype(jnp.float32)
        rel = rel.astype(jnp.float32)

    def gather(idx_col, table, n_rows):
        # idx_col: (tb, 1) int32 ; table: (n_rows, E) f32
        iota = lax.broadcasted_iota(jnp.int32, (tb, n_rows), 1)
        onehot = (idx_col == iota).astype(jnp.float32)
        return jnp.dot(onehot, table, preferred_element_type=jnp.float32)

    se = gather(s_ref[...], ent, n_ent)
    pe = gather(p_ref[...], rel, n_rel)
    oe = gather(o_ref[...], ent, n_ent)

    out_ref[...] = jnp.sum(se * pe * oe, axis=-1, keepdims=True)


def _distmult_scores_fused(ent, rel, s_idx, p_idx, o_idx, *, rows_per_tile=1024):
    """Indices (B,) int32 + small tables -> scores (B,) float32, gather fused."""
    B = s_idx.shape[0]
    n_ent, E = ent.shape
    n_rel = rel.shape[0]
    itemsize = ent.dtype.itemsize

    # Pad table row counts to a sublane multiple (one-time, cheap).
    n_ent_p = _round_up(n_ent, 8)
    n_rel_p = _round_up(n_rel, 8)
    if n_ent_p != n_ent:
        ent = jnp.pad(ent, ((0, n_ent_p - n_ent), (0, 0)))
    if n_rel_p != n_rel:
        rel = jnp.pad(rel, ((0, n_rel_p - n_rel), (0, 0)))

    tb = min(rows_per_tile, _round_up(B, 8))
    b_pad = _round_up(B, tb)
    if b_pad != B:
        pad = (0, b_pad - B)
        # Padded rows gather row 0 and produce garbage scores -> sliced off below.
        s_idx = jnp.pad(s_idx, pad)
        p_idx = jnp.pad(p_idx, pad)
        o_idx = jnp.pad(o_idx, pad)

    s2 = s_idx.reshape(b_pad, 1)
    p2 = p_idx.reshape(b_pad, 1)
    o2 = o_idx.reshape(b_pad, 1)

    grid = (b_pad // tb,)
    idx_spec = pl.BlockSpec((tb, 1), lambda i: (i, 0))
    ent_spec = pl.BlockSpec((n_ent_p, E), lambda i: (0, 0))   # resident, fetched once
    rel_spec = pl.BlockSpec((n_rel_p, E), lambda i: (0, 0))   # resident, fetched once
    out_spec = pl.BlockSpec((tb, 1), lambda i: (i, 0))

    cost = pl.CostEstimate(
        flops=2 * b_pad * E * (2 * n_ent_p + n_rel_p) + 3 * b_pad * E,
        transcendentals=0,
        bytes_accessed=3 * b_pad * 4
        + (n_ent_p + n_rel_p) * E * itemsize
        + b_pad * 4,
    )

    out = pl.pallas_call(
        _fused_distmult_kernel,
        out_shape=jax.ShapeDtypeStruct((b_pad, 1), jnp.float32),
        grid_spec=pltpu.PrefetchScalarGridSpec(
            num_scalar_prefetch=0,
            grid=grid,
            in_specs=[idx_spec, idx_spec, idx_spec, ent_spec, rel_spec],
            out_specs=out_spec,
        ),
        compiler_params=pltpu.CompilerParams(
            dimension_semantics=("parallel",),
            vmem_limit_bytes=32 * 1024 * 1024,
        ),
        cost_estimate=cost,
    )(s2, p2, o2, ent, rel)

    return out.reshape(-1)[:B]


# ---------------------------------------------------------------------------
# Fallback path: plain-JAX gather outside, lane-packed elementwise + MXU
# selector-matmul reduction inside.  Used when tables are too large to keep
# resident in VMEM.
# ---------------------------------------------------------------------------
def _make_pregathered_kernel(e_dim, pack):
    lane_dim = pack * e_dim

    def kernel(se_ref, pe_ref, oe_ref, out_ref):
        se = se_ref[...]
        pe = pe_ref[...]
        oe = oe_ref[...]
        if se.dtype != jnp.float32:
            se = se.astype(jnp.float32)
            pe = pe.astype(jnp.float32)
            oe = oe.astype(jnp.float32)
        prod = se * pe * oe                                  # (rows, lane_dim)
        if pack == 1:
            out_ref[...] = jnp.sum(prod, axis=-1, keepdims=True)
        else:
            # Block-diagonal 0/1 selector: one MXU matmul does all `pack`
            # per-triple grouped lane sums at once.
            lane = lax.broadcasted_iota(jnp.int32, (lane_dim, pack), 0)
            col = lax.broadcasted_iota(jnp.int32, (lane_dim, pack), 1)
            sel = (lane // e_dim == col).astype(jnp.float32)
            out_ref[...] = jnp.dot(prod, sel, preferred_element_type=jnp.float32)

    return kernel


def _distmult_scores_pregathered(ent, rel, s_idx, p_idx, o_idx, *,
                                 rows_per_tile=4096):
    B = s_idx.shape[0]
    E = ent.shape[1]
    itemsize = ent.dtype.itemsize

    # Pack several triples per 128-lane row when E divides 128 (E=32 -> 4).
    pack = (128 // E) if (E <= 128 and 128 % E == 0) else 1
    lane_dim = pack * E

    sub = 16 if itemsize == 2 else 8                     # sublane alignment
    rows_needed = -(-B // pack)
    # Cap per-input block at ~2 MiB: 3 inputs x 2 buffers ~= 12 MiB per step,
    # safe on v7x (64 MiB VMEM) while large enough to hit HBM roofline.
    rpt_cap = max(sub, (2 * 1024 * 1024) // (lane_dim * itemsize))
    rpt_cap = max(sub, (rpt_cap // sub) * sub)
    rpt = min(rows_per_tile, rpt_cap, _round_up(rows_needed, sub))
    rpt = max(sub, (rpt // sub) * sub)
    rows_padded = _round_up(rows_needed, rpt)
    b_padded = rows_padded * pack

    if b_padded != B:
        pad = (0, b_padded - B)
        # Pad the cheap int32 indices, not the gathered (B, E) embeddings.
        # Tail rows gather row 0 -> garbage scores, sliced off below.
        s_idx = jnp.pad(s_idx, pad)
        p_idx = jnp.pad(p_idx, pad)
        o_idx = jnp.pad(o_idx, pad)

    # TODO(synk): replace this plain-JAX gather with a double-buffered
    # make_async_copy row-gather (pattern P4) driven by scalar-prefetched
    # indices to halve HBM traffic for large tables.
    se = jnp.take(ent, s_idx, axis=0)
    pe = jnp.take(rel, p_idx, axis=0)
    oe = jnp.take(ent, o_idx, axis=0)
    if pack > 1:
        se = se.reshape(rows_padded, lane_dim)
        pe = pe.reshape(rows_padded, lane_dim)
        oe = oe.reshape(rows_padded, lane_dim)

    grid = (rows_padded // rpt,)
    in_spec = pl.BlockSpec((rpt, lane_dim), lambda i: (i, 0))
    out_spec = pl.BlockSpec((rpt, pack), lambda i: (i, 0))

    cost = pl.CostEstimate(
        flops=3 * rows_padded * lane_dim,
        transcendentals=0,
        bytes_accessed=3 * rows_padded * lane_dim * itemsize
        + rows_padded * pack * 4,
    )

    out = pl.pallas_call(
        _make_pregathered_kernel(E, pack),
        out_shape=jax.ShapeDtypeStruct((rows_padded, pack), jnp.float32),
        grid_spec=pltpu.PrefetchScalarGridSpec(
            num_scalar_prefetch=0,
            grid=grid,
            in_specs=[in_spec, in_spec, in_spec],
            out_specs=out_spec,
        ),
        compiler_params=pltpu.CompilerParams(
            dimension_semantics=("parallel",),
            vmem_limit_bytes=32 * 1024 * 1024,
        ),
        cost_estimate=cost,
    )(se, pe, oe)

    return out.reshape(-1)[:B]


# ---------------------------------------------------------------------------
# Public scoring entry point + model wrapper.
# ---------------------------------------------------------------------------
_FUSED_MAX_TABLE_ROWS = 256   # one-hot MXU gather only pays off for small tables


def distmult_scores(ent, rel, s_idx, p_idx, o_idx, *, fuse_gather=None):
    """DistMult scores for flat int32 index triples. Returns (B,) float32."""
    n_ent = ent.shape[0]
    n_rel = rel.shape[0]
    if fuse_gather is None:
        fuse_gather = (n_ent <= _FUSED_MAX_TABLE_ROWS
                       and n_rel <= _FUSED_MAX_TABLE_ROWS)
    if fuse_gather:
        return _distmult_scores_fused(ent, rel, s_idx, p_idx, o_idx)
    return _distmult_scores_pregathered(ent, rel, s_idx, p_idx, o_idx)


class KGEModelPallas:
    """DistMult KGE scorer (reciprocal=False, biases=False) with Pallas hot paths."""

    def __init__(self, num_entities, num_relations, embedding_dim=512,
                 init=0.85, param_dtype=jnp.float32, key=None):
        if key is None:
            key = jax.random.PRNGKey(0)
        ke, kr = jax.random.split(key)
        # uniform init in [-init, init], matching init_method='uniform'
        self.ent_emb = jax.random.uniform(
            ke, (num_entities, embedding_dim), jnp.float32, -init, init
        ).astype(param_dtype)
        self.rel_emb = jax.random.uniform(
            kr, (num_relations, embedding_dim), jnp.float32, -init, init
        ).astype(param_dtype)

    def __call__(self, s, p, o):
        s, p, o = jnp.broadcast_arrays(jnp.asarray(s), jnp.asarray(p), jnp.asarray(o))
        orig_shape = s.shape
        scores = distmult_scores(
            self.ent_emb, self.rel_emb,
            s.reshape(-1).astype(jnp.int32),
            p.reshape(-1).astype(jnp.int32),
            o.reshape(-1).astype(jnp.int32),
        )
        return scores.reshape(orig_shape)


if __name__ == "__main__":
    key = jax.random.PRNGKey(0)
    k_model, k_s, k_p, k_o = jax.random.split(key, 4)

    num_entities = 16
    num_relations = 4
    embedding_dim = 32
    batch = 8

    model = KGEModelPallas(num_entities, num_relations, embedding_dim,
                           init=0.85, key=k_model)

    s = jax.random.randint(k_s, (batch,), 0, num_entities, dtype=jnp.int32)
    p = jax.random.randint(k_p, (batch,), 0, num_relations, dtype=jnp.int32)
    o = jax.random.randint(k_o, (batch,), 0, num_entities, dtype=jnp.int32)

    # pure-JAX reference (same stored parameters, f32 math)
    ent = model.ent_emb.astype(jnp.float32)
    rel = model.rel_emb.astype(jnp.float32)
    ref = jnp.sum(ent[s] * rel[p] * ent[o], axis=-1)

    # Fused small-table path (what the model picks for these shapes).
    scores_fused = jax.block_until_ready(model(s, p, o))
    assert scores_fused.shape == (batch,)
    assert jnp.allclose(scores_fused, ref, atol=1e-4, rtol=1e-4)

    # Pre-gathered fallback path (used for large tables).
    scores_pg = jax.block_until_ready(
        distmult_scores(model.ent_emb, model.rel_emb, s, p, o, fuse_gather=False))
    assert scores_pg.shape == (batch,)
    assert jnp.allclose(scores_pg, ref, atol=1e-4, rtol=1e-4)

    print("KERNEL_OK")
</pallas_src>

<mosaic_0001>
module attributes {stable_mosaic.version = 11 : i64} {
  func.func @_fused_distmult_kernel(%arg0: i32, %arg1: memref<8x1xi32, #tpu.memory_space<vmem>>, %arg2: memref<8x1xi32, #tpu.memory_space<vmem>>, %arg3: memref<8x1xi32, #tpu.memory_space<vmem>>, %arg4: memref<16x32xf32, #tpu.memory_space<vmem>>, %arg5: memref<8x32xf32, #tpu.memory_space<vmem>>, %arg6: memref<8x1xf32, #tpu.memory_space<vmem>>) attributes {dimension_semantics = [#tpu.dimension_semantics<parallel>], iteration_bounds = array<i64: 1>, scalar_prefetch = 0 : i64, scratch_operands = 0 : i64, tpu.core_type = #tpu.core_type<tc>, window_params = [{transform_indices = @transform_0, window_bounds = array<i64: 8, 1>}, {transform_indices = @transform_1, window_bounds = array<i64: 8, 1>}, {transform_indices = @transform_2, window_bounds = array<i64: 8, 1>}, {pipeline_mode = #tpu.pipeline_mode<synchronous>, transform_indices = @transform_3, window_bounds = array<i64: 16, 32>}, {pipeline_mode = #tpu.pipeline_mode<synchronous>, transform_indices = @transform_4, window_bounds = array<i64: 8, 32>}, {transform_indices = @transform_5, window_bounds = array<i64: 8, 1>}]} {
    %c0 = arith.constant 0 : index
    %c0_0 = arith.constant 0 : index
    %0 = vector.load %arg4[%c0, %c0_0] : memref<16x32xf32, #tpu.memory_space<vmem>>, vector<16x32xf32>
    %c0_1 = arith.constant 0 : index
    %c0_2 = arith.constant 0 : index
    %1 = vector.load %arg5[%c0_1, %c0_2] : memref<8x32xf32, #tpu.memory_space<vmem>>, vector<8x32xf32>
    %c0_3 = arith.constant 0 : index
    %c0_4 = arith.constant 0 : index
    %2 = vector.load %arg1[%c0_3, %c0_4] : memref<8x1xi32, #tpu.memory_space<vmem>>, vector<8x1xi32>
    %3 = tpu.iota {dimensions = array<i32: 1>} : vector<8x16xi32>
    %4 = vector.broadcast %2 : vector<8x1xi32> to vector<8x16xi32>
    %5 = arith.cmpi eq, %4, %3 : vector<8x16xi32>
    %6 = arith.extui %5 : vector<8x16xi1> to vector<8x16xi32>
    %7 = arith.sitofp %6 : vector<8x16xi32> to vector<8x16xf32>
    %cst = arith.constant dense<0.000000e+00> : vector<8x32xf32>
    %8 = tpu.matmul %7, %0, %cst {dimension_numbers = #tpu.dot_dimension_numbers<[1], [0], [0], [1], [0, 0, 1, 1], [], []>} : vector<8x16xf32>, vector<16x32xf32>, vector<8x32xf32> -> vector<8x32xf32>
    %c0_5 = arith.constant 0 : index
    %c0_6 = arith.constant 0 : index
    %9 = vector.load %arg2[%c0_5, %c0_6] : memref<8x1xi32, #tpu.memory_space<vmem>>, vector<8x1xi32>
    %10 = tpu.iota {dimensions = array<i32: 1>} : vector<8x8xi32>
    %11 = vector.broadcast %9 : vector<8x1xi32> to vector<8x8xi32>
    %12 = arith.cmpi eq, %11, %10 : vector<8x8xi32>
    %13 = arith.extui %12 : vector<8x8xi1> to vector<8x8xi32>
    %14 = arith.sitofp %13 : vector<8x8xi32> to vector<8x8xf32>
    %cst_7 = arith.constant dense<0.000000e+00> : vector<8x32xf32>
    %15 = tpu.matmul %14, %1, %cst_7 {dimension_numbers = #tpu.dot_dimension_numbers<[1], [0], [0], [1], [0, 0, 1, 1], [], []>} : vector<8x8xf32>, vector<8x32xf32>, vector<8x32xf32> -> vector<8x32xf32>
    %c0_8 = arith.constant 0 : index
    %c0_9 = arith.constant 0 : index
    %16 = vector.load %arg3[%c0_8, %c0_9] : memref<8x1xi32, #tpu.memory_space<vmem>>, vector<8x1xi32>
    %17 = tpu.iota {dimensions = array<i32: 1>} : vector<8x16xi32>
    %18 = vector.broadcast %16 : vector<8x1xi32> to vector<8x16xi32>
    %19 = arith.cmpi eq, %18, %17 : vector<8x16xi32>
    %20 = arith.extui %19 : vector<8x16xi1> to vector<8x16xi32>
    %21 = arith.sitofp %20 : vector<8x16xi32> to vector<8x16xf32>
    %cst_10 = arith.constant dense<0.000000e+00> : vector<8x32xf32>
    %22 = tpu.matmul %21, %0, %cst_10 {dimension_numbers = #tpu.dot_dimension_numbers<[1], [0], [0], [1], [0, 0, 1, 1], [], []>} : vector<8x16xf32>, vector<16x32xf32>, vector<8x32xf32> -> vector<8x32xf32>
    %23 = arith.mulf %8, %15 : vector<8x32xf32>
    %24 = arith.mulf %23, %22 : vector<8x32xf32>
    %cst_11 = arith.constant dense<0.000000e+00> : vector<8xf32>
    %25 = vector.multi_reduction <add>, %24, %cst_11 [1] : vector<8x32xf32> to vector<8xf32>
    %26 = vector.shape_cast %25 : vector<8xf32> to vector<8x1xf32>
    %c0_12 = arith.constant 0 : index
    %c0_13 = arith.constant 0 : index
    %27 = vector.load %arg6[%c0_12, %c0_13] : memref<8x1xf32, #tpu.memory_space<vmem>>, vector<8x1xf32>
    tpu.vector_store %arg6[%c0_12, %c0_13], %26 {strides = array<i32>} : memref<8x1xf32, #tpu.memory_space<vmem>>, vector<8x1xf32>,
    return
  }
  func.func @transform_0(%arg0: i32) -> (i32, i32) {
    %c0_i32 = arith.constant 0 : i32
    %c0_i32_0 = arith.constant 0 : i32
    return %arg0, %c0_i32 : i32, i32
  }
  func.func @transform_1(%arg0: i32) -> (i32, i32) {
    %c0_i32 = arith.constant 0 : i32
    %c0_i32_0 = arith.constant 0 : i32
    return %arg0, %c0_i32 : i32, i32
  }
  func.func @transform_2(%arg0: i32) -> (i32, i32) {
    %c0_i32 = arith.constant 0 : i32
    %c0_i32_0 = arith.constant 0 : i32
    return %arg0, %c0_i32 : i32, i32
  }
  func.func @transform_3(%arg0: i32) -> (i32, i32) {
    %c0_i32 = arith.constant 0 : i32
    %c0_i32_0 = arith.constant 0 : i32
    %c0_i32_1 = arith.constant 0 : i32
    return %c0_i32, %c0_i32_0 : i32, i32
  }
  func.func @transform_4(%arg0: i32) -> (i32, i32) {
    %c0_i32 = arith.constant 0 : i32
    %c0_i32_0 = arith.constant 0 : i32
    %c0_i32_1 = arith.constant 0 : i32
    return %c0_i32, %c0_i32_0 : i32, i32
  }
  func.func @transform_5(%arg0: i32) -> (i32, i32) {
    %c0_i32 = arith.constant 0 : i32
    %c0_i32_0 = arith.constant 0 : i32
    return %arg0, %c0_i32 : i32, i32
  }
}

</mosaic_0001>

<bundles_post_ra>
// kernel: tpu_custom_call.1
= control target key start
LH: loop header
LB: loop body
LE: loop exit
PB: predicated region body
PF: predicated region fallthrough
CT: control target
= control target key end

     0   :  { %v317_v0 = vmov 0   ;;  %v318_v6 = vmov 0.0   ;;  %vm319_vm0 = vmmov 0   ;;  %v24_v8 = vlaneseq  ;;  %s374_s1 = inlined_call_operand.vmem [shape: s32[8,1], index: 1, kind: input, shape index: {}]   ;;  %s375_s2 = inlined_call_operand.vmem [shape: s32[8,1], index: 2, kind: input, shape index: {}]   ;;  %s376_s0 = inlined_call_operand.vmem [shape: s32[8,1], index: 0, kind: input, shape index: {}]   ;;  %s377_s4 = inlined_call_operand.vmem [shape: f32[8,32], index: 4, kind: input, shape index: {}]   ;;  %s378_s3 = inlined_call_operand.vmem [shape: f32[16,32], index: 3, kind: input, shape index: {}]   ;;  %s379_s5 = inlined_call_operand.vmem [shape: f32[8,1], index: 5, kind: output, shape index: {}]  }
   0x1   :  { %315 = vset.pattern.permute.xlu0 %v317_v0  ;;  %v106_v1 = vld [vmem:[%s374_s1] sm:$0xff]  ;;  %316 = vset.pattern.permute.xlu1 %v317_v0  ;;  %v21_v4 = vld [vmem:[%s378_s3 + $0x8] sm:$0xff]  ;;  %vm113_vm1 = vcmask 64512   ;;  %vm32_vm4 = vcmask 130048   ;;  %vm269_vm6 = vcmask 261120   ;;  %vm273_vm7 = vcmask 7168  }
   0x2   :  { %v187_v2 = vld [vmem:[%s375_s2] sm:$0xff]  ;;  %108 = vperm.xlu0 %315, %v106_v1   ;;  %300 = vmatprep.subr.mxu1 %v318_v6  ;;  %v25_v9 = vand.u32 127, %v24_v8 }
   0x3   :  { %189 = vperm.xlu1 %316, %v187_v2   ;;  %v22_v3 = vld [vmem:[%s377_s4] sm:$0xff]  ;;  %302 = vmatprep.mubr.msk.f32.mxu1 %vm319_vm0, %v318_v6 }
   0x4   :  { %v23_v5 = vld [vmem:[%s376_s0] sm:$0xff]  ;;  %301 = vmatpush3.msra.mxu1 %v22_v3  ;;  %293 = vmatprep.subr.mxu0 %v318_v6 }
   0x5   :  { %v20_v7 = vld [vmem:[%s378_s3] sm:$0xff]  ;;  %305 = vmatprep.subr.mxu1 %v318_v6  ;;  %294 = vmatpush3.msra.mxu0 %v21_v4 }
   0x6   :  { %27 = vperm.xlu0 %315, %v23_v5   ;;  %295 = vmatprep.subr.mxu0 %v318_v6 }
   0x7   :  { %296 = vmatpush3.msra.mxu0 %v20_v7  ;;  %297 = vmatprep.mubr.msk.f32.mxu0 %vm319_vm0, %v318_v6 }
  0x7d   :  { %v109_v10 = vpop.permute.xlu0 %108 }
  0x7e   :  { %v190_v11 = vpop.permute.xlu1 %189  ;;  %vm110_vm2 = vcmp.eq.s32.totalorder %v109_v10, %v25_v9 }
  0x7f   :  { %vm191_vm3 = vcmp.eq.s32.totalorder %v190_v11, %v25_v9  ;;  %v281_v12 = vsel %vm110_vm2, 1.0, %v318_v6 }
  0x80   :  { %303 = vmatmul.mubr.msk.f32.vlgmr.msra.gmra.mxu1 %vm113_vm1, %v281_v12  ;;  %v283_v13 = vsel %vm191_vm3, 1.0, %v318_v6 }
  0x81   :  { %306 = vmatpush3.msra.mxu1 %v21_v4  ;;  %v28_v14 = vpop.permute.xlu0 %27  ;;  %309 = vmatprep.mubr.msk.f32.mxu1 %vm319_vm0, %v318_v6 }
  0x82   :  { %vm29_vm5 = vcmp.eq.s32.totalorder %v28_v14, %v25_v9  ;;  %307 = vmatprep.subr.mxu1 %v318_v6 }
  0x83   :  { %v279_v15 = vsel %vm29_vm5, 1.0, %v318_v6  ;;  %308 = vmatpush3.msra.mxu1 %v20_v7 }
  0x84   :  { %298 = vmatmul.mubr.msk.f32.vlgmr.msra.gmra.mxu0 %vm32_vm4, %v279_v15  ;;  %310 = vmatmul.mubr.msk.f32.vlgmr.msra.gmra.mxu1 %vm32_vm4, %v283_v13 }
 0x140   :  { %v183_v16 = vpop.f32.mrf.mxu1 }
 0x142   :  { %v304_v17 = vpop.f32.mrf.mxu1 }
 0x144   :  { %v102_v18 = vpop.f32.mrf.mxu0  ;;  %v263_v19 = vpop.f32.mrf.mxu1 }
 0x145   :  { %v267_v20 = vmul.f32 %v183_v16, %v102_v18 }
 0x146   :  { %v299_v21 = vpop.f32.mrf.mxu0  ;;  %v311_v22 = vpop.f32.mrf.mxu1 }
 0x147   :  { %v268_v23 = vmul.f32 %v267_v20, %v263_v19 }
 0x149   :  { %v270_v24 = vsel %vm269_vm6, %v268_v23, 0.0 }
 0x14a   :  { %271 = vadd.xlane.f32.xlu1 %v270_v24 }
 0x1d3   :  { %v272_v25 = vpop.xlane.xlu1 %271 }
 0x1d4   :  { %274 = vst.msk [vmem:[%s379_s5] sm:$0xff] %vm273_vm7, %v272_v25 }

</bundles_post_ra>
